<compile_context>
chip_gen: v5e
topology: v5e:2x2
jax: 0.10.0
libtpu: 0.0.40
codegen_flags: <defaults>
</compile_context>

<pallas_src>
import jax
import jax.numpy as jnp
from jax.experimental import pallas as pl
from jax.experimental.pallas import tpu as pltpu


LANES = 128           # lane-dense last dim (multiple of 128 -> unmasked stores)
MAX_TILE_ROWS = 2048  # 1 MiB f32 per buffer; safe on v5e/v6e/v7x double-buffered
PALLAS_MIN_N = 4096   # below this, plain XLA beats pallas_call dispatch cost


def linear_kernel(x_ref, w_ref, b_ref, o_ref):
    # x_ref / o_ref: (tile_rows, LANES) VMEM tiles.
    # w_ref / b_ref: (1,) SMEM scalars (the Linear(1,1) weight and bias).
    w = w_ref[0]
    b = b_ref[0]
    # y = x @ W^T + b  ==  x * w + b  for in_features = out_features = 1.
    o_ref[...] = x_ref[...] * w + b


def _pallas_linear_slab(x_slab, w_s, b_s):
    """Apply y = x*w + b over a lane-dense (rows, 128) f32 slab."""
    rows = x_slab.shape[0]
    # Block shape must be (8,128)-divisible OR equal to the full array dims;
    # both branches below satisfy that.
    tile_rows = rows if rows <= MAX_TILE_ROWS else MAX_TILE_ROWS
    n_elems = rows * LANES
    return pl.pallas_call(
        linear_kernel,
        out_shape=jax.ShapeDtypeStruct((rows, LANES), x_slab.dtype),
        grid=(pl.cdiv(rows, tile_rows),),   # ragged last block is masked by Pallas
        in_specs=[
            pl.BlockSpec((tile_rows, LANES), lambda i: (i, 0)),
            pl.BlockSpec(memory_space=pltpu.MemorySpace.SMEM),
            pl.BlockSpec(memory_space=pltpu.MemorySpace.SMEM),
        ],
        out_specs=pl.BlockSpec((tile_rows, LANES), lambda i: (i, 0)),
        compiler_params=pltpu.CompilerParams(
            dimension_semantics=("parallel",)),
        cost_estimate=pl.CostEstimate(
            flops=2 * n_elems, transcendentals=0, bytes_accessed=8 * n_elems),
    )(x_slab, w_s, b_s)


def simple_nn_forward(x, weight, bias):
    """Forward pass of SimpleNN: nn.Linear(1, 1).

    x:      (N, 1) float32
    weight: (1, 1) float32  (out_features, in_features)
    bias:   (1,)   float32
    returns (N, 1) float32
    """
    n, f = x.shape
    assert f == 1 and weight.shape == (1, 1) and bias.shape == (1,)

    w = weight.reshape(())
    b = bias.reshape(())

    # Small-N fast path: pallas_call dispatch + reshapes dominate here; a plain
    # XLA fusion is 5-10x faster for tiny batches.
    if n < PALLAS_MIN_N:
        return x * w + b

    w_s = weight.reshape(1)
    b_s = bias.reshape(1)

    # Kernel handles the 128-aligned prefix via a free reshape (no pad, no copy).
    n_main = (n // LANES) * LANES
    rows = n_main // LANES
    x_main = x[:n_main].reshape(rows, LANES)
    y_main = _pallas_linear_slab(x_main, w_s, b_s).reshape(n_main, 1)

    if n_main == n:
        return y_main

    # Ragged <=127-element tail in plain JAX (cheaper than padding the whole array).
    y_tail = x[n_main:] * w + b
    return jnp.concatenate([y_main, y_tail], axis=0)


if __name__ == "__main__":
    key = jax.random.PRNGKey(0)
    kx, kw, kb, kx2, kx3 = jax.random.split(key, 5)

    weight = jax.random.uniform(kw, (1, 1), minval=-1.0, maxval=1.0,
                                dtype=jnp.float32)
    bias = jax.random.uniform(kb, (1,), minval=-1.0, maxval=1.0,
                              dtype=jnp.float32)

    # 1) Demo-sized batch of 8 scalar inputs (matches the PyTorch module usage):
    #    takes the small-N plain-XLA fast path.
    x_small = jax.random.normal(kx, (8, 1), dtype=jnp.float32)
    y_small = jax.block_until_ready(simple_nn_forward(x_small, weight, bias))
    assert y_small.shape == (8, 1)
    assert jnp.allclose(y_small, x_small @ weight.T + bias, atol=1e-6), \
        "small-N mismatch vs reference"

    # 2) Ragged batch that exercises the Pallas kernel (128-aligned prefix + tail).
    n_mid = 8 * 1024 + 37
    x_mid = jax.random.normal(kx2, (n_mid, 1), dtype=jnp.float32)
    y_mid = jax.block_until_ready(simple_nn_forward(x_mid, weight, bias))
    assert y_mid.shape == (n_mid, 1)
    assert jnp.allclose(y_mid, x_mid @ weight.T + bias, atol=1e-6), \
        "mid-N mismatch vs reference"

    # 3) Batch large enough to exercise the multi-tile grid with a masked
    #    (partial) last block: rows = 2343 > MAX_TILE_ROWS -> grid of 2.
    n_big = 300_005
    x_big = jax.random.normal(kx3, (n_big, 1), dtype=jnp.float32)
    y_big = jax.block_until_ready(simple_nn_forward(x_big, weight, bias))
    assert y_big.shape == (n_big, 1)
    assert jnp.allclose(y_big, x_big @ weight.T + bias, atol=1e-6), \
        "big-N mismatch vs reference"

    print("KERNEL_OK")
</pallas_src>

<mosaic_0001>
module attributes {stable_mosaic.version = 11 : i64} {
  func.func @linear_kernel(%arg0: i32, %arg1: memref<64x128xf32, #tpu.memory_space<vmem>>, %arg2: memref<1xf32, #tpu.memory_space<smem>>, %arg3: memref<1xf32, #tpu.memory_space<smem>>, %arg4: memref<64x128xf32, #tpu.memory_space<vmem>>) attributes {dimension_semantics = [#tpu.dimension_semantics<parallel>], iteration_bounds = array<i64: 1>, scalar_prefetch = 0 : i64, scratch_operands = 0 : i64, tpu.core_type = #tpu.core_type<tc>, window_params = [{transform_indices = @transform_0, window_bounds = array<i64: 64, 128>}, {transform_indices = @transform_1, window_bounds = array<i64: 1>}, {transform_indices = @transform_2, window_bounds = array<i64: 1>}, {transform_indices = @transform_3, window_bounds = array<i64: 64, 128>}]} {
    %c0 = arith.constant 0 : index
    %0 = memref.load %arg2[%c0] : memref<1xf32, #tpu.memory_space<smem>>
    %c0_0 = arith.constant 0 : index
    %1 = memref.load %arg3[%c0_0] : memref<1xf32, #tpu.memory_space<smem>>
    %c0_1 = arith.constant 0 : index
    %c0_2 = arith.constant 0 : index
    %2 = vector.load %arg1[%c0_1, %c0_2] : memref<64x128xf32, #tpu.memory_space<vmem>>, vector<64x128xf32>
    %3 = vector.broadcast %0 : f32 to vector<64x128xf32>
    %4 = arith.mulf %2, %3 : vector<64x128xf32>
    %5 = vector.broadcast %1 : f32 to vector<64x128xf32>
    %6 = arith.addf %4, %5 : vector<64x128xf32>
    %c0_3 = arith.constant 0 : index
    %c0_4 = arith.constant 0 : index
    %7 = vector.load %arg4[%c0_3, %c0_4] : memref<64x128xf32, #tpu.memory_space<vmem>>, vector<64x128xf32>
    tpu.vector_store %arg4[%c0_3, %c0_4], %6 {strides = array<i32>} : memref<64x128xf32, #tpu.memory_space<vmem>>, vector<64x128xf32>,
    return
  }
  func.func @transform_0(%arg0: i32) -> (i32, i32) {
    %c0_i32 = arith.constant 0 : i32
    %c0_i32_0 = arith.constant 0 : i32
    return %arg0, %c0_i32 : i32, i32
  }
  func.func @transform_1(%arg0: i32) -> i32 {
    %c0_i32 = arith.constant 0 : i32
    %c0_i32_0 = arith.constant 0 : i32
    return %c0_i32 : i32
  }
  func.func @transform_2(%arg0: i32) -> i32 {
    %c0_i32 = arith.constant 0 : i32
    %c0_i32_0 = arith.constant 0 : i32
    return %c0_i32 : i32
  }
  func.func @transform_3(%arg0: i32) -> (i32, i32) {
    %c0_i32 = arith.constant 0 : i32
    %c0_i32_0 = arith.constant 0 : i32
    return %arg0, %c0_i32 : i32, i32
  }
}

</mosaic_0001>

<bundles_post_ra>
// kernel: tpu_custom_call.1
= control target key start
LH: loop header
LB: loop body
LE: loop exit
PB: predicated region body
PF: predicated region fallthrough
CT: control target
= control target key end

     0   :  { %10 = vsyncpa [#allocation5], 0  ;;  %s186_s0 = inlined_call_operand.hbm [shape: f32[64,128], index: 0, kind: input, shape index: {}]   ;;  %s187_s1 = inlined_call_operand.<no memory space> [shape: f32[1], index: 1, kind: input, shape index: {}]   ;;  %s188_s2 = inlined_call_operand.<no memory space> [shape: f32[1], index: 2, kind: input, shape index: {}]   ;;  %s189_s3 = inlined_call_operand.hbm [shape: f32[64,128], index: 3, kind: output, shape index: {}]  }
   0x1   :  { %11 = vsyncpa [#allocation6], 0  ;;  %s16_s14 = sshll.u32 %s186_s0, 4  ;;  %s144_s15 = smov [#allocation4]   ;;  %s17_s14 = int_to_ptr.hbm [resolvable:$true] %s16_s14 }
   0x2   :  { %s18_s16 = sshll.u32 %s144_s15, 4  ;;  %s145_s17 = smov 128   ;;  %s19_s16 = int_to_ptr.vmem [resolvable:$true] %s18_s16 }
   0x3   :  { %s146_s18 = smov 8  }
   0x4   :  { %24 = dma.hbm_to_vmem [thread:$0]  %s17_s14, 1024, %s19_s16, [#allocation5], %s145_s17, %s145_s17, %s146_s18  }
   0x5   :  { %140 = dma.done.wait [#allocation5], 1024  }
   0x6   :  { %141 = vsyncadd [#allocation5], 4294966272  ;;  %v43_v0 = vstv %s187_s1  ;;  %v35_v1 = vld [vmem:[#allocation4] sm:$0xff]  ;;  %v52_v2 = vstv %s188_s2  ;;  %v36_v3 = vld [vmem:[#allocation4 + $0x8] sm:$0xff]  ;;  %s147_s0 = smov [#allocation7]   ;;  %s75_s24 = sshll.u32 %s189_s3, 4  ;;  %s76_s24 = int_to_ptr.hbm [resolvable:$true] %s75_s24 }
   0x7   :  { %v37_v4 = vld [vmem:[#allocation4 + $0x10] sm:$0xff]  ;;  %v44_v5 = vmul.f32 %v43_v0, %v35_v1  ;;  %v45_v6 = vmul.f32 %v43_v0, %v36_v3  ;;  %v38_v8 = vld [vmem:[#allocation4 + $0x18] sm:$0xff]  ;;  %v39_v9 = vld [vmem:[#allocation4 + $0x20] sm:$0xff]  ;;  %s73_s1 = sshll.u32 %s147_s0, 4  ;;  %s74_s1 = int_to_ptr.vmem [resolvable:$true] %s73_s1 }
   0x8   :  { %v46_v7 = vmul.f32 %v43_v0, %v37_v4  ;;  %v40_v10 = vld [vmem:[#allocation4 + $0x28] sm:$0xff]  ;;  %v47_v11 = vmul.f32 %v43_v0, %v38_v8  ;;  %v48_v12 = vmul.f32 %v43_v0, %v39_v9  ;;  %v41_v14 = vld [vmem:[#allocation4 + $0x30] sm:$0xff]  ;;  %v42_v15 = vld [vmem:[#allocation4 + $0x38] sm:$0xff] }
   0x9   :  { %v49_v13 = vmul.f32 %v43_v0, %v40_v10  ;;  %v53_v16 = vadd.f32 %v52_v2, %v44_v5  ;;  %v54_v17 = vadd.f32 %v52_v2, %v45_v6  ;;  %v50_v19 = vmul.f32 %v43_v0, %v41_v14 }
   0xa   :  { %v55_v18 = vadd.f32 %v52_v2, %v46_v7  ;;  %v56_v20 = vadd.f32 %v52_v2, %v47_v11  ;;  %v51_v21 = vmul.f32 %v43_v0, %v42_v15  ;;  %v57_v22 = vadd.f32 %v52_v2, %v48_v12 }
   0xb   :  { %61 = vst [vmem:[#allocation7] sm:$0xff] %v53_v16  ;;  %v58_v23 = vadd.f32 %v52_v2, %v49_v13  ;;  %v59_v24 = vadd.f32 %v52_v2, %v50_v19 }
   0xc   :  { %62 = vst [vmem:[#allocation7 + $0x8] sm:$0xff] %v54_v17  ;;  %v60_v25 = vadd.f32 %v52_v2, %v51_v21 }
   0xd   :  { %63 = vst [vmem:[#allocation7 + $0x10] sm:$0xff] %v55_v18 }
   0xe   :  { %64 = vst [vmem:[#allocation7 + $0x18] sm:$0xff] %v56_v20 }
   0xf   :  { %65 = vst [vmem:[#allocation7 + $0x20] sm:$0xff] %v57_v22 }
  0x10   :  { %66 = vst [vmem:[#allocation7 + $0x28] sm:$0xff] %v58_v23 }
  0x11   :  { %67 = vst [vmem:[#allocation7 + $0x30] sm:$0xff] %v59_v24 }
  0x12   :  { %68 = vst [vmem:[#allocation7 + $0x38] sm:$0xff] %v60_v25 }
  0x13   :  { %81 = dma.vmem_to_hbm [thread:$0]  %s74_s1, 1024, %s76_s24, [#allocation6], %s145_s17, %s145_s17, %s146_s18  }
  0x14   :  { %142 = dma.done.wait [#allocation6], 1024  }
  0x15   :  { %143 = vsyncadd [#allocation6], 4294966272 }
  0x16   :  { %86 = vsyncpa [#allocation5], 1 }
  0x17   :  { %87 = vsyncpa [#allocation6], 1 }

</bundles_post_ra>
